<compile_context>
chip_gen: v7x
topology: tpu7x:2x2x1
jax: 0.10.0
libtpu: 0.0.40
codegen_flags: <defaults>
</compile_context>

<pallas_src>
import functools

import jax
import jax.numpy as jnp
from jax.experimental import pallas as pl
from jax.experimental.pallas import tpu as pltpu


def _round_up(x: int, m: int) -> int:
    return (x + m - 1) // m * m


def _num_tensorcores() -> int:
    # Best-effort detection: v7x has 2 TensorCores per chip, v5e/v6e have 1.
    try:
        kind = jax.devices()[0].device_kind.lower()
        if "v7" in kind:
            return 2
    except Exception:
        pass
    return 1


# ----------------------------------------------------------------------------
# Kernel: fused twin-Q MLP (3 matmuls, one lane-dense (bt, L) output)
# ----------------------------------------------------------------------------
def _critic_kernel(state_ref, action_ref, w_ref, b_ref, q_ref, *,
                   state_dim, action_dim, off_a, off_2, off_3, lanes):
    s = state_ref[...]
    a = action_ref[...]

    # Static slices into the fused weight slab (all lane-width `lanes`).
    ws = w_ref[0:state_dim, :]                    # (S, L)   layer 1, state part
    wa = w_ref[off_a:off_a + action_dim, :]       # (A, L)   layer 1, action part
    w2 = w_ref[off_2:off_2 + lanes, :]            # (L, L)   block-diag hidden layer
    w3 = w_ref[off_3:off_3 + lanes, :]            # (L, L)   block-diag output layer
                                                  #          (cols 0/1 live, rest 0)
    b1 = b_ref[0:1, :]                            # (1, L)
    b2 = b_ref[1:2, :]                            # (1, L)
    b3 = b_ref[2:3, :]                            # (1, L)   padded lanes are zero

    # Layer 1: folded concat — state @ Ws + action @ Wa + b1, ReLU.
    # NOTE: if batch is not a multiple of bt, the last grid block computes on
    # Pallas-padded (undefined) rows; the output writeback is masked so results
    # stay correct — garbage only flows through padded rows' intermediates.
    h = (jnp.dot(s, ws, preferred_element_type=jnp.float32)
         + jnp.dot(a, wa, preferred_element_type=jnp.float32)
         + b1)
    h = jnp.maximum(h, 0.0)

    # Layer 2 (both heads via block-diagonal W2), ReLU.  Padded lanes stay 0.
    h = jnp.dot(h, w2, preferred_element_type=jnp.float32) + b2
    h = jnp.maximum(h, 0.0)

    # Output layer: lane-dense (bt, L) store; q1 in lane 0, q2 in lane 1.
    q_ref[...] = jnp.dot(h, w3, preferred_element_type=jnp.float32) + b3


# ----------------------------------------------------------------------------
# Wrapper
# ----------------------------------------------------------------------------
@functools.partial(jax.jit, static_argnames=("num_tc",))
def _critic_forward_impl(state, action, w_slab, b_slab, num_tc):
    state = state.astype(jnp.float32)
    action = action.astype(jnp.float32)

    batch, state_dim = state.shape
    action_dim = action.shape[1]
    lanes = w_slab.shape[1]                    # round_up(2*hidden, 128)
    s_pad = _round_up(state_dim, 8)
    a_pad = _round_up(action_dim, 8)
    off_a = s_pad
    off_2 = s_pad + a_pad
    off_3 = off_2 + lanes

    # Batch tiling:
    #   * dual-TC chips (v7x): split large batches into exactly num_tc parallel
    #     blocks so "parallel" dimension_semantics can shard across cores.
    #   * single-TC chips (v5e/v6e): one grid step (grid splitting is pure
    #     per-step overhead), capped at 4096 rows (<3 MiB VMEM working set).
    if num_tc > 1 and batch >= 512:
        bt = _round_up(pl.cdiv(batch, num_tc), 8)
    else:
        bt = batch if batch <= 4096 else 4096
    grid = (pl.cdiv(batch, bt),)

    kernel = functools.partial(
        _critic_kernel,
        state_dim=state_dim, action_dim=action_dim,
        off_a=off_a, off_2=off_2, off_3=off_3, lanes=lanes)

    q12 = pl.pallas_call(
        kernel,
        out_shape=jax.ShapeDtypeStruct((batch, lanes), jnp.float32),
        grid_spec=pltpu.PrefetchScalarGridSpec(
            num_scalar_prefetch=0,
            grid=grid,
            in_specs=[
                pl.BlockSpec((bt, state_dim), lambda i: (i, 0)),
                pl.BlockSpec((bt, action_dim), lambda i: (i, 0)),
                pl.BlockSpec(w_slab.shape, lambda i: (0, 0)),   # resident weights
                pl.BlockSpec(b_slab.shape, lambda i: (0, 0)),   # resident biases
            ],
            out_specs=pl.BlockSpec((bt, lanes), lambda i: (i, 0)),
        ),
        compiler_params=pltpu.CompilerParams(
            dimension_semantics=("parallel",)),
    )(state, action, w_slab, b_slab)

    # Split the lane-packed output back into the module's (q1, q2) signature.
    return q12[:, 0:1], q12[:, 1:2]


def critic_forward(state, action, w_slab, b_slab):
    """state: (B, S), action: (B, A), fused slabs -> (q1, q2), each (B, 1)."""
    return _critic_forward_impl(state, action, w_slab, b_slab,
                                num_tc=_num_tensorcores())


# ----------------------------------------------------------------------------
# Parameter construction (mirrors nn.Linear default init) + one-time packing
# ----------------------------------------------------------------------------
def init_critic_params(key, state_dim, action_dim, hidden_dim=32,
                       n_hidden_layers=2):
    assert n_hidden_layers == 2, "this script instantiates the default depth"
    in_dim = state_dim + action_dim

    def linear(key, fan_in, fan_out):
        # PyTorch nn.Linear default: U(-1/sqrt(fan_in), 1/sqrt(fan_in)).
        kw, kb = jax.random.split(key)
        bound = 1.0 / jnp.sqrt(jnp.float32(fan_in))
        # Stored as (in, out) so the kernel can do x @ W directly.
        w = jax.random.uniform(kw, (fan_in, fan_out), jnp.float32, -bound, bound)
        b = jax.random.uniform(kb, (1, fan_out), jnp.float32, -bound, bound)
        return w, b

    keys = jax.random.split(key, 6)
    w11, b11 = linear(keys[0], in_dim, hidden_dim)
    w12, b12 = linear(keys[1], hidden_dim, hidden_dim)
    w13, b13 = linear(keys[2], hidden_dim, 1)
    w21, b21 = linear(keys[3], in_dim, hidden_dim)
    w22, b22 = linear(keys[4], hidden_dim, hidden_dim)
    w23, b23 = linear(keys[5], hidden_dim, 1)
    return (w11, b11, w12, b12, w13, b13,
            w21, b21, w22, b22, w23, b23)


def pack_critic_params(raw_params, state_dim, action_dim, hidden_dim):
    """One-time fusion of the twin heads into lane-dense weight/bias slabs.

    Feature width 2*hidden is zero-padded up to a multiple of 128 lanes so
    every vreg / MXU N-dimension is fully utilized and output stores are
    lane-dense.  All padded bias lanes are ZERO (required for correctness:
    ReLU(0)=0 keeps padded lanes inert through the network).
    """
    (w11, b11, w12, b12, w13, b13,
     w21, b21, w22, b22, w23, b23) = raw_params
    H, H2 = hidden_dim, 2 * hidden_dim
    L = _round_up(H2, 128)                    # lane-dense feature width
    s_pad = _round_up(state_dim, 8)
    a_pad = _round_up(action_dim, 8)

    # First layer: concat heads along the output axis, split state/action rows
    # (each section padded to a multiple of 8 sublanes for aligned slab slices).
    w1f = jnp.concatenate([w11, w21], axis=1)                       # (S+A, 2H)
    ws = jnp.zeros((s_pad, L), jnp.float32).at[:state_dim, :H2].set(w1f[:state_dim])
    wa = jnp.zeros((a_pad, L), jnp.float32).at[:action_dim, :H2].set(w1f[state_dim:])

    # Hidden layer: block-diagonal (L, L); padded rows/cols are zero.
    w2f = (jnp.zeros((L, L), jnp.float32)
           .at[:H, :H].set(w12)
           .at[H:H2, H:H2].set(w22))

    # Output layer: block-diagonal, q1 weights in lane 0, q2 weights in lane 1.
    w3f = (jnp.zeros((L, L), jnp.float32)
           .at[:H, 0].set(w13[:, 0])
           .at[H:H2, 1].set(w23[:, 0]))

    w_slab = jnp.concatenate([ws, wa, w2f, w3f], axis=0)            # (s_pad+a_pad+2L, L)

    b1f = jnp.zeros((L,), jnp.float32).at[:H].set(b11[0]).at[H:H2].set(b21[0])
    b2f = jnp.zeros((L,), jnp.float32).at[:H].set(b12[0]).at[H:H2].set(b22[0])
    b3f = jnp.zeros((L,), jnp.float32).at[0].set(b13[0, 0]).at[1].set(b23[0, 0])
    b_slab = jnp.stack([b1f, b2f, b3f], axis=0)                     # (3, L)
    return w_slab, b_slab


# Pure-JAX reference (unfused, mirrors the PyTorch module) for correctness.
def critic_reference(state, action, raw_params):
    x = jnp.concatenate([state, action], axis=1).astype(jnp.float32)
    (w11, b11, w12, b12, w13, b13,
     w21, b21, w22, b22, w23, b23) = raw_params

    def mlp(x, w1, b1, w2, b2, w3, b3):
        h = jax.nn.relu(x @ w1 + b1)
        h = jax.nn.relu(h @ w2 + b2)
        return h @ w3 + b3

    return (mlp(x, w11, b11, w12, b12, w13, b13),
            mlp(x, w21, b21, w22, b22, w23, b23))


if __name__ == "__main__":
    key = jax.random.PRNGKey(0)
    k_params, k_state, k_action, k_s2, k_a2 = jax.random.split(key, 5)

    # Small shapes consistent with the module's forward.
    batch, state_dim, action_dim, hidden_dim = 4, 8, 4, 32

    raw_params = init_critic_params(k_params, state_dim, action_dim, hidden_dim)
    w_slab, b_slab = pack_critic_params(raw_params, state_dim, action_dim, hidden_dim)

    state = jax.random.normal(k_state, (batch, state_dim), jnp.float32)
    action = jax.random.normal(k_action, (batch, action_dim), jnp.float32)

    q1, q2 = critic_forward(state, action, w_slab, b_slab)
    jax.block_until_ready((q1, q2))

    q1_ref, q2_ref = critic_reference(state, action, raw_params)
    assert q1.shape == (batch, 1) and q2.shape == (batch, 1)
    assert jnp.allclose(q1, q1_ref, atol=1e-4, rtol=1e-4)
    assert jnp.allclose(q2, q2_ref, atol=1e-4, rtol=1e-4)

    # Exercise the large-batch path (grid splits across TCs on v7x; single
    # grid step on single-TC v5e/v6e).
    big = 2048
    state_b = jax.random.normal(k_s2, (big, state_dim), jnp.float32)
    action_b = jax.random.normal(k_a2, (big, action_dim), jnp.float32)
    q1b, q2b = critic_forward(state_b, action_b, w_slab, b_slab)
    jax.block_until_ready((q1b, q2b))
    q1b_ref, q2b_ref = critic_reference(state_b, action_b, raw_params)
    assert jnp.allclose(q1b, q1b_ref, atol=1e-4, rtol=1e-4)
    assert jnp.allclose(q2b, q2b_ref, atol=1e-4, rtol=1e-4)

    print("KERNEL_OK")
</pallas_src>

<mosaic_0001>
module attributes {stable_mosaic.version = 11 : i64} {
  func.func @_critic_kernel(%arg0: i32, %arg1: memref<4x8xf32, #tpu.memory_space<vmem>>, %arg2: memref<4x4xf32, #tpu.memory_space<vmem>>, %arg3: memref<272x128xf32, #tpu.memory_space<vmem>>, %arg4: memref<3x128xf32, #tpu.memory_space<vmem>>, %arg5: memref<4x128xf32, #tpu.memory_space<vmem>>) attributes {dimension_semantics = [#tpu.dimension_semantics<parallel>], iteration_bounds = array<i64: 1>, scalar_prefetch = 0 : i64, scratch_operands = 0 : i64, tpu.core_type = #tpu.core_type<tc>, window_params = [{transform_indices = @transform_0, window_bounds = array<i64: 4, 8>}, {transform_indices = @transform_1, window_bounds = array<i64: 4, 4>}, {pipeline_mode = #tpu.pipeline_mode<synchronous>, transform_indices = @transform_2, window_bounds = array<i64: 272, 128>}, {pipeline_mode = #tpu.pipeline_mode<synchronous>, transform_indices = @transform_3, window_bounds = array<i64: 3, 128>}, {transform_indices = @transform_4, window_bounds = array<i64: 4, 128>}]} {
    %c0 = arith.constant 0 : index
    %c0_0 = arith.constant 0 : index
    %0 = vector.load %arg1[%c0, %c0_0] : memref<4x8xf32, #tpu.memory_space<vmem>>, vector<4x8xf32>
    %c0_1 = arith.constant 0 : index
    %c0_2 = arith.constant 0 : index
    %1 = vector.load %arg2[%c0_1, %c0_2] : memref<4x4xf32, #tpu.memory_space<vmem>>, vector<4x4xf32>
    %c0_3 = arith.constant 0 : index
    %c0_4 = arith.constant 0 : index
    %2 = vector.load %arg3[%c0_3, %c0_4] : memref<272x128xf32, #tpu.memory_space<vmem>>, vector<8x128xf32>
    %c8 = arith.constant 8 : index
    %c0_5 = arith.constant 0 : index
    %3 = vector.load %arg3[%c8, %c0_5] : memref<272x128xf32, #tpu.memory_space<vmem>>, vector<4x128xf32>
    %c16 = arith.constant 16 : index
    %c0_6 = arith.constant 0 : index
    %4 = vector.load %arg3[%c16, %c0_6] : memref<272x128xf32, #tpu.memory_space<vmem>>, vector<128x128xf32>
    %c144 = arith.constant 144 : index
    %c0_7 = arith.constant 0 : index
    %5 = vector.load %arg3[%c144, %c0_7] : memref<272x128xf32, #tpu.memory_space<vmem>>, vector<128x128xf32>
    %c0_8 = arith.constant 0 : index
    %c0_9 = arith.constant 0 : index
    %6 = vector.load %arg4[%c0_8, %c0_9] : memref<3x128xf32, #tpu.memory_space<vmem>>, vector<1x128xf32>
    %c1 = arith.constant 1 : index
    %c0_10 = arith.constant 0 : index
    %7 = vector.load %arg4[%c1, %c0_10] : memref<3x128xf32, #tpu.memory_space<vmem>>, vector<1x128xf32>
    %c2 = arith.constant 2 : index
    %c0_11 = arith.constant 0 : index
    %8 = vector.load %arg4[%c2, %c0_11] : memref<3x128xf32, #tpu.memory_space<vmem>>, vector<1x128xf32>
    %cst = arith.constant dense<0.000000e+00> : vector<4x128xf32>
    %9 = tpu.matmul %0, %2, %cst {dimension_numbers = #tpu.dot_dimension_numbers<[1], [0], [0], [1], [0, 0, 1, 1], [], []>} : vector<4x8xf32>, vector<8x128xf32>, vector<4x128xf32> -> vector<4x128xf32>
    %cst_12 = arith.constant dense<0.000000e+00> : vector<4x128xf32>
    %10 = tpu.matmul %1, %3, %cst_12 {dimension_numbers = #tpu.dot_dimension_numbers<[1], [0], [0], [1], [0, 0, 1, 1], [], []>} : vector<4x4xf32>, vector<4x128xf32>, vector<4x128xf32> -> vector<4x128xf32>
    %11 = arith.addf %9, %10 : vector<4x128xf32>
    %12 = vector.broadcast %6 : vector<1x128xf32> to vector<4x128xf32>
    %13 = arith.addf %11, %12 : vector<4x128xf32>
    %cst_13 = arith.constant 0.000000e+00 : f32
    %14 = vector.broadcast %cst_13 : f32 to vector<4x128xf32>
    %15 = arith.maximumf %13, %14 : vector<4x128xf32>
    %cst_14 = arith.constant dense<0.000000e+00> : vector<4x128xf32>
    %16 = tpu.matmul %15, %4, %cst_14 {dimension_numbers = #tpu.dot_dimension_numbers<[1], [0], [0], [1], [0, 0, 1, 1], [], []>} : vector<4x128xf32>, vector<128x128xf32>, vector<4x128xf32> -> vector<4x128xf32>
    %17 = vector.broadcast %7 : vector<1x128xf32> to vector<4x128xf32>
    %18 = arith.addf %16, %17 : vector<4x128xf32>
    %cst_15 = arith.constant 0.000000e+00 : f32
    %19 = vector.broadcast %cst_15 : f32 to vector<4x128xf32>
    %20 = arith.maximumf %18, %19 : vector<4x128xf32>
    %cst_16 = arith.constant dense<0.000000e+00> : vector<4x128xf32>
    %21 = tpu.matmul %20, %5, %cst_16 {dimension_numbers = #tpu.dot_dimension_numbers<[1], [0], [0], [1], [0, 0, 1, 1], [], []>} : vector<4x128xf32>, vector<128x128xf32>, vector<4x128xf32> -> vector<4x128xf32>
    %22 = vector.broadcast %8 : vector<1x128xf32> to vector<4x128xf32>
    %23 = arith.addf %21, %22 : vector<4x128xf32>
    %c0_17 = arith.constant 0 : index
    %c0_18 = arith.constant 0 : index
    %24 = vector.load %arg5[%c0_17, %c0_18] : memref<4x128xf32, #tpu.memory_space<vmem>>, vector<4x128xf32>
    tpu.vector_store %arg5[%c0_17, %c0_18], %23 {strides = array<i32>} : memref<4x128xf32, #tpu.memory_space<vmem>>, vector<4x128xf32>,
    return
  }
  func.func @transform_0(%arg0: i32) -> (i32, i32) {
    %c0_i32 = arith.constant 0 : i32
    %c0_i32_0 = arith.constant 0 : i32
    return %arg0, %c0_i32 : i32, i32
  }
  func.func @transform_1(%arg0: i32) -> (i32, i32) {
    %c0_i32 = arith.constant 0 : i32
    %c0_i32_0 = arith.constant 0 : i32
    return %arg0, %c0_i32 : i32, i32
  }
  func.func @transform_2(%arg0: i32) -> (i32, i32) {
    %c0_i32 = arith.constant 0 : i32
    %c0_i32_0 = arith.constant 0 : i32
    %c0_i32_1 = arith.constant 0 : i32
    return %c0_i32, %c0_i32_0 : i32, i32
  }
  func.func @transform_3(%arg0: i32) -> (i32, i32) {
    %c0_i32 = arith.constant 0 : i32
    %c0_i32_0 = arith.constant 0 : i32
    %c0_i32_1 = arith.constant 0 : i32
    return %c0_i32, %c0_i32_0 : i32, i32
  }
  func.func @transform_4(%arg0: i32) -> (i32, i32) {
    %c0_i32 = arith.constant 0 : i32
    %c0_i32_0 = arith.constant 0 : i32
    return %arg0, %c0_i32 : i32, i32
  }
}

</mosaic_0001>

<bundles_post_ra>
// kernel: _critic_forward_impl.1
= control target key start
LH: loop header
LB: loop body
LE: loop exit
PB: predicated region body
PF: predicated region fallthrough
CT: control target
= control target key end

     0   :  { %9 = vsyncpa [#allocation3], 0  ;;  %s758_s0 = inlined_call_operand.hbm [shape: f32[4,8], index: 0, kind: input, shape index: {}]   ;;  %s759_s1 = inlined_call_operand.hbm [shape: f32[4,4], index: 1, kind: input, shape index: {}]   ;;  %s760_s2 = inlined_call_operand.hbm [shape: f32[272,128], index: 2, kind: input, shape index: {}]   ;;  %s761_s3 = inlined_call_operand.vmem [shape: f32[3,128], index: 3, kind: input, shape index: {}]   ;;  %s762_s4 = inlined_call_operand.vmem [shape: f32[4,128], index: 4, kind: output, shape index: {}]  }
   0x1   :  { %10 = vsyncpa [#allocation5], 0  ;;  %s657_s15 = smov [#allocation4]   ;;  %s658_s17 = smov [#allocation2]  }
   0x2   :  { %s27_s16 = sshll.u32 %s657_s15, 4  ;;  %s17_s18 = sshll.u32 %s658_s17, 4  ;;  %s28_s16 = int_to_ptr.vmem [resolvable:$true] %s27_s16  ;;  %s18_s18 = int_to_ptr.vmem [resolvable:$true] %s17_s18 }
   0x3   :  { %s587_s21 = scalar_lea.hbm %s759_s1, 64 }
   0x4   :  { %p588_p0 = scmp.ne.s32.totalorder %s759_s1, %s587_s21  ;;  %p591_p1 = scmp.lt.u32.totalorder %s587_s21, %s759_s1 }
   0x6   :  { %p593_p2 = pnand %p591_p1, %p588_p0 }
   0x8   :  { %596 = shalt.err (!%p593_p2)
}
   0x9   :  { %s597_s26 = scalar_lea.vmem %s28_s16, 64  ;;  %p602_p4 = scmp.lt.s32.totalorder %s28_s16, %s28_s16 }
   0xa   :  { %p598_p3 = scmp.ne.s32.totalorder %s28_s16, %s597_s26  ;;  %p603_p5 = scmp.lt.s32.totalorder %s597_s26, %s597_s26 }
   0xc   :  { %p604_p6 = por %p603_p5, %p602_p4 }
   0xe   :  { %p605_p7 = pnand %p604_p6, %p598_p3 }
  0x10   :  { %608 = shalt.err (!%p605_p7)
}
  0x11   :  { %30 = dma.hbm_to_vmem [thread:$0]  %s759_s1, 64, %s28_s16, [#allocation5]  }
  0x12   :  { %s609_s5 = scalar_lea.hbm %s758_s0, 64 }
  0x13   :  { %p610_p8 = scmp.ne.s32.totalorder %s758_s0, %s609_s5  ;;  %p613_p9 = scmp.lt.u32.totalorder %s609_s5, %s758_s0 }
  0x15   :  { %p615_p10 = pnand %p613_p9, %p610_p8 }
  0x17   :  { %618 = shalt.err (!%p615_p10)
}
  0x18   :  { %s619_s10 = scalar_lea.vmem %s18_s18, 64  ;;  %p624_p12 = scmp.lt.s32.totalorder %s18_s18, %s18_s18 }
  0x19   :  { %p620_p11 = scmp.ne.s32.totalorder %s18_s18, %s619_s10  ;;  %p625_p13 = scmp.lt.s32.totalorder %s619_s10, %s619_s10 }
  0x1b   :  { %p626_p0 = por %p625_p13, %p624_p12 }
  0x1d   :  { %p627_p1 = pnand %p626_p0, %p620_p11 }
  0x1f   :  { %630 = shalt.err (!%p627_p1)
}
  0x20   :  { %20 = dma.hbm_to_vmem [thread:$0]  %s758_s0, 64, %s18_s18, [#allocation3]  }
  0x21   :  { %s659_s12 = smov [#allocation6]   ;;  %s631_s16 = scalar_lea.hbm %s760_s2, 4352 }
  0x22   :  { %s36_s13 = sshll.u32 %s659_s12, 4  ;;  %p632_p2 = scmp.ne.s32.totalorder %s760_s2, %s631_s16  ;;  %s37_s13 = int_to_ptr.vmem [resolvable:$true] %s36_s13 }
  0x23   :  { %p635_p3 = scmp.lt.u32.totalorder %s631_s16, %s760_s2 }
  0x25   :  { %p637_p4 = pnand %p635_p3, %p632_p2 }
  0x27   :  { %640 = shalt.err (!%p637_p4)
}
  0x28   :  { %s641_s22 = scalar_lea.vmem %s37_s13, 4352  ;;  %p646_p6 = scmp.lt.s32.totalorder %s37_s13, %s37_s13 }
  0x29   :  { %p642_p5 = scmp.ne.s32.totalorder %s37_s13, %s641_s22  ;;  %p647_p7 = scmp.lt.s32.totalorder %s641_s22, %s641_s22 }
  0x2b   :  { %p648_p8 = por %p647_p7, %p646_p6 }
  0x2d   :  { %p649_p9 = pnand %p648_p8, %p642_p5 }
  0x2f   :  { %652 = shalt.err (!%p649_p9)
}
  0x30   :  { %s660_s0 = smov 128   ;;  %s661_s18 = smov 8  }
  0x31   :  { %42 = dma.hbm_to_vmem [thread:$0]  %s760_s2, 4352, %s37_s13, [#allocation5], %s660_s0, %s660_s0, %s661_s18  }
  0x32   :  { %653 = dma.done.wait [#allocation3], 64  }
  0x33   :  { %654 = vsyncadd [#allocation3], 4294967232 }
  0x34   :  { %655 = dma.done.wait [#allocation5], 4416  }
  0x35   :  { %656 = vsyncadd [#allocation5], 4294962880  ;;  %v662_v0 = vmov 0.0   ;;  %vm663_vm0 = vmmov 0   ;;  %vm97_vm1 = vcmask 1043456   ;;  %vm93_vm2 = vcmask 31744  }
  0x36   :  { %451 = vmatprep.subr.mxu0 %v662_v0  ;;  %456 = vmatprep.subr.mxu1 %v662_v0  ;;  %vm171_vm3 = vcmask 64512   ;;  %v57_v1 = vld [vmem:[#allocation6 + $0x8] sm:$0xf]  ;;  %v56_v2 = vld [vmem:[#allocation6] sm:$0xff]  ;;  %v55_v3 = vld [vmem:[#allocation4] sm:$0xf] }
  0x37   :  { %453 = vmatprep.mubr.msk.f32.mxu0 %vm663_vm0, %v662_v0  ;;  %458 = vmatprep.mubr.msk.f32.mxu1 %vm663_vm0, %v662_v0  ;;  %v54_v4 = vld [vmem:[#allocation2] sm:$0xf]  ;;  %v58_v5 = vld [vmem:[#allocation6 + $0x10] sm:$0xff]  ;;  %v60_v8 = vld [vmem:[#allocation6 + $0x20] sm:$0xff]  ;;  %v664_v10 = vmov 0.0|0.0  }
  0x38   :  { %452 = vmatpush3.msk.msra.mxu0 %vm97_vm1, %v57_v1  ;;  %457 = vmatpush3.msra.mxu1 %v56_v2  ;;  %v59_v6 = vld [vmem:[#allocation6 + $0x18] sm:$0xff]  ;;  %v61_v9 = vld [vmem:[#allocation6 + $0x28] sm:$0xff]  ;;  %v62_v12 = vld [vmem:[#allocation6 + $0x30] sm:$0xff] }
  0x39   :  { %454 = vmatmul.mubr.msk.f32.vlgmr.msra.gmra.mrb[0].mxu0 %vm93_vm2, %v55_v3  ;;  %459 = vmatmul.mubr.msk.f32.vlgmr.msra.gmra.mrb[0].mxu1 %vm171_vm3, %v54_v4  ;;  %v532_v7 = vpack.c.bf16 %v59_v6, %v58_v5  ;;  %v535_v11 = vpack.c.bf16 %v61_v9, %v60_v8  ;;  %v63_v13 = vld [vmem:[#allocation6 + $0x38] sm:$0xff]  ;;  %v64_v15 = vld [vmem:[#allocation6 + $0x40] sm:$0xff]  ;;  %v65_v16 = vld [vmem:[#allocation6 + $0x48] sm:$0xff] }
  0x3a   :  { %531 = vmatprep.subr.bf16.mxu0 %v664_v10  ;;  %493 = vmatprep.mubr.msk.f32.mxu0 %vm663_vm0, %v662_v0  ;;  %v538_v14 = vpack.c.bf16 %v63_v13, %v62_v12  ;;  %v541_v17 = vpack.c.bf16 %v65_v16, %v64_v15  ;;  %v66_v18 = vld [vmem:[#allocation6 + $0x50] sm:$0xff]  ;;  %v67_v19 = vld [vmem:[#allocation6 + $0x58] sm:$0xff]  ;;  %v68_v21 = vld [vmem:[#allocation6 + $0x60] sm:$0xff] }
  0x3b   :  { %533 = vmatpush3.bf16.msra.mxu0 %v532_v7  ;;  %555 = vmatprep.subr.bf16.mxu1 %v664_v10  ;;  %v544_v20 = vpack.c.bf16 %v67_v19, %v66_v18  ;;  %v69_v22 = vld [vmem:[#allocation6 + $0x68] sm:$0xff]  ;;  %v70_v24 = vld [vmem:[#allocation6 + $0x70] sm:$0xff]  ;;  %v71_v25 = vld [vmem:[#allocation6 + $0x78] sm:$0xff] }
  0x3c   :  { %534 = vmatprep.subr.bf16.mxu0 %v664_v10  ;;  %528 = vmatprep.mubr.msk.f32.mxu1 %vm663_vm0, %v662_v0  ;;  %v547_v23 = vpack.c.bf16 %v69_v22, %v68_v21  ;;  %v550_v26 = vpack.c.bf16 %v71_v25, %v70_v24  ;;  %v72_v27 = vld [vmem:[#allocation6 + $0x80] sm:$0xff]  ;;  %v73_v28 = vld [vmem:[#allocation6 + $0x88] sm:$0xff]  ;;  %v74_v30 = vld [vmem:[#allocation6 + $0x90] sm:$0xff] }
  0x3d   :  { %v553_v29 = vpack.c.bf16 %v73_v28, %v72_v27  ;;  %v75_v31 = vld [vmem:[#allocation6 + $0x98] sm:$0xff]  ;;  %v76_v32 = vld [vmem:[#allocation6 + $0xa0] sm:$0xff]  ;;  %v77_v34 = vld [vmem:[#allocation6 + $0xa8] sm:$0xff] }
  0x3e   :  { %v556_v33 = vpack.c.bf16 %v75_v31, %v74_v30  ;;  %v559_v35 = vpack.c.bf16 %v77_v34, %v76_v32  ;;  %v78_v36 = vld [vmem:[#allocation6 + $0xb0] sm:$0xff]  ;;  %v79_v37 = vld [vmem:[#allocation6 + $0xb8] sm:$0xff]  ;;  %v80_v39 = vld [vmem:[#allocation6 + $0xc0] sm:$0xff] }
  0x3f   :  { %536 = vmatpush3.bf16.msra.mxu0 %v535_v11  ;;  %v562_v38 = vpack.c.bf16 %v79_v37, %v78_v36  ;;  %v81_v40 = vld [vmem:[#allocation6 + $0xc8] sm:$0xff]  ;;  %v82_v42 = vld [vmem:[#allocation6 + $0xd0] sm:$0xff]  ;;  %v83_v43 = vld [vmem:[#allocation6 + $0xd8] sm:$0xff] }
  0x40   :  { %537 = vmatprep.subr.bf16.mxu0 %v664_v10  ;;  %557 = vmatpush3.bf16.msra.mxu1 %v556_v33  ;;  %v565_v41 = vpack.c.bf16 %v81_v40, %v80_v39  ;;  %v568_v44 = vpack.c.bf16 %v83_v43, %v82_v42  ;;  %v84_v45 = vld [vmem:[#allocation6 + $0xe0] sm:$0xff]  ;;  %v85_v46 = vld [vmem:[#allocation6 + $0xe8] sm:$0xff]  ;;  %v86_v48 = vld [vmem:[#allocation6 + $0xf0] sm:$0xff] }
  0x41   :  { %558 = vmatprep.subr.bf16.mxu1 %v664_v10  ;;  %v571_v47 = vpack.c.bf16 %v85_v46, %v84_v45  ;;  %v87_v49 = vld [vmem:[#allocation6 + $0xf8] sm:$0xff]  ;;  %v88_v59 = vld [vmem:[#allocation6 + $0x100] sm:$0xff]  ;;  %v89_v60 = vld [vmem:[#allocation6 + $0x108] sm:$0xff] }
  0x42   :  { %v574_v50 = vpack.c.bf16 %v87_v49, %v86_v48  ;;  %v410_v52 = vld [vmem:[%s761_s3] ss:$0 sm:$0xff]  ;;  %v577_v61 = vpack.c.bf16 %v89_v60, %v88_v59  ;;  %v411_v62 = vld [vmem:[%s761_s3 + $0x1] ss:$0 sm:$0xff]  ;;  %v412_v3 = vld [vmem:[%s761_s3 + $0x2] ss:$0 sm:$0xff] }
  0x43   :  { %539 = vmatpush3.bf16.msra.mxu0 %v538_v14 }
  0x44   :  { %540 = vmatprep.subr.bf16.mxu0 %v664_v10  ;;  %560 = vmatpush3.bf16.msra.mxu1 %v559_v35 }
  0x45   :  { %561 = vmatprep.subr.bf16.mxu1 %v664_v10 }
  0x47   :  { %542 = vmatpush3.bf16.msra.mxu0 %v541_v17 }
  0x48   :  { %543 = vmatprep.subr.bf16.mxu0 %v664_v10  ;;  %563 = vmatpush3.bf16.msra.mxu1 %v562_v38 }
  0x49   :  { %564 = vmatprep.subr.bf16.mxu1 %v664_v10 }
  0x4b   :  { %545 = vmatpush3.bf16.msra.mxu0 %v544_v20 }
  0x4c   :  { %546 = vmatprep.subr.bf16.mxu0 %v664_v10  ;;  %566 = vmatpush3.bf16.msra.mxu1 %v565_v41 }
  0x4d   :  { %567 = vmatprep.subr.bf16.mxu1 %v664_v10 }
  0x4f   :  { %548 = vmatpush3.bf16.msra.mxu0 %v547_v23 }
  0x50   :  { %549 = vmatprep.subr.bf16.mxu0 %v664_v10  ;;  %569 = vmatpush3.bf16.msra.mxu1 %v568_v44 }
  0x51   :  { %570 = vmatprep.subr.bf16.mxu1 %v664_v10 }
  0x53   :  { %551 = vmatpush3.bf16.msra.mxu0 %v550_v26 }
  0x54   :  { %552 = vmatprep.subr.bf16.mxu0 %v664_v10  ;;  %572 = vmatpush3.bf16.msra.mxu1 %v571_v47 }
  0x55   :  { %573 = vmatprep.subr.bf16.mxu1 %v664_v10 }
  0x57   :  { %554 = vmatpush3.bf16.msra.mxu0 %v553_v29 }
  0x58   :  { %575 = vmatpush3.bf16.msra.mxu1 %v574_v50 }
  0x59   :  { %576 = vmatprep.subr.bf16.mxu1 %v664_v10 }
  0x5c   :  { %578 = vmatpush3.bf16.msra.mxu1 %v577_v61 }
 0x10c   :  { %v167_v51 = vpop.f32.mrb[0].mxu0  ;;  %v241_v53 = vpop.f32.mrb[0].mxu1 }
 0x10d   :  { %v242_v54 = vadd.f32 %v241_v53, %v167_v51  ;;  %v455_v55 = vpop.f32.mrb[1].mxu0  ;;  %v460_v56 = vpop.f32.mrb[1].mxu1 }
 0x10f   :  { %v249_v57 = vadd.f32 %v410_v52, %v242_v54 }
 0x111   :  { %v250_v58 = vmax.f32 %v249_v57, 0.0 }
 0x113   :  { %494 = vmatmul.mubr.f32.vlgmr.msra.gmra.mrb[2].mxu0 %v250_v58 }
 0x1e6   :  { %v321_v63 = vpop.f32.mrb[2].mxu0 }
 0x1e7   :  { %v322_v0 = vadd.f32 %v411_v62, %v321_v63  ;;  %v495_v1 = vpop.f32.mrb[3].mxu0 }
 0x1e9   :  { %v325_v2 = vmax.f32 %v322_v0, 0.0 }
 0x1eb   :  { %529 = vmatmul.mubr.f32.vlgmr.msra.gmra.mrb[2].mxu1 %v325_v2 }
 0x2be   :  { %v396_v4 = vpop.f32.mrb[2].mxu1 }
 0x2bf   :  { %v397_v5 = vadd.f32 %v412_v3, %v396_v4  ;;  %v530_v6 = vpop.f32.mrb[3].mxu1 }
 0x2c1   :  { %400 = vst [vmem:[%s762_s4] sm:$0xf] %v397_v5 }
 0x2c2   :  { %405 = vsyncpa [#allocation3], 1 }
 0x2c3   :  { %406 = vsyncpa [#allocation5], 1 }

</bundles_post_ra>
